<compile_context>
chip_gen: v6e
topology: v6e:2x2x1
jax: 0.10.0
libtpu: 0.0.40
codegen_flags: <defaults>
</compile_context>

<pallas_src>
import jax
import jax.numpy as jnp
from jax import lax
from jax.experimental import pallas as pl
from jax.experimental.pallas import tpu as pltpu


def _round_up(x, m):
    return (x + m - 1) // m * m


def _maybe_pad2d(arr, rows, cols):
    r, c = arr.shape
    if r == rows and c == cols:
        return arr
    return jnp.pad(arr, ((0, rows - r), (0, cols - c)))


def _vmem_capacity_bytes():
    try:
        return int(pltpu.get_tpu_info().vmem_capacity_bytes)
    except Exception:
        return 64 * 1024 * 1024  # conservative fallback (v7x per-TensorCore)


def _default_tiles(vmem_cap):
    if vmem_cap >= 100 * 1024 * 1024:   # v5e / v6e: 128 MiB VMEM per core
        return 512, 512, 1024
    return 256, 512, 1024               # v7x: 64 MiB VMEM per core


def _vmem_limit_bytes(tm, tn, tk, r_pad, k_pad, vmem_cap):
    f32b = 4
    per_step = tm * tk + 2 * tn * tk + tn * r_pad + tn   # x, w0, w_lora, A, bias
    resident = r_pad * k_pad                             # B (constant block index)
    out_blk = tm * tn                                    # resident output block
    scratch = tm * r_pad                                 # xb scratch
    total = f32b * (2 * (per_step + resident + out_blk) + scratch)
    limit = int(total * 1.25) + (2 << 20)
    limit = max(limit, 32 * 1024 * 1024)                 # never below default scoped limit
    return min(limit, int(vmem_cap * 0.9))               # leave headroom (matters on v7x)


def lora_linear(x, w0, bias, w_lora, a, b, *, alpha=1.0, tm=None, tn=None, tk=None):
    """LoRALinear forward.  x:(M,K)  w0,w_lora:(N,K)  bias:(N,)  a:(N,r)  b:(r,K)."""
    M, K = x.shape
    N = w0.shape[0]
    rank = a.shape[1]
    scaling = float(alpha) / float(rank)
    f32 = jnp.float32

    vmem_cap = _vmem_capacity_bytes()
    dtm, dtn, dtk = _default_tiles(vmem_cap)
    tm = dtm if tm is None else tm
    tn = dtn if tn is None else tn
    tk = dtk if tk is None else tk

    # Cap tiles at the (aligned) problem dims.
    tm = min(tm, _round_up(M, 8))
    tn = min(tn, _round_up(N, 128))
    tk = min(tk, _round_up(K, 128))
    M_pad = _round_up(M, tm)
    N_pad = _round_up(N, tn)
    K_pad = _round_up(K, tk)
    R_pad = _round_up(rank, 128)  # lane-dense low-rank intermediate (zero-padded)

    # Pad only when needed; scaling folded into A (tiny (N, r) pass).
    xp = _maybe_pad2d(x.astype(f32), M_pad, K_pad)
    w0p = _maybe_pad2d(w0.astype(f32), N_pad, K_pad)
    wlp = _maybe_pad2d(w_lora.astype(f32), N_pad, K_pad)
    bp = _maybe_pad2d(b.astype(f32), R_pad, K_pad)
    ap = _maybe_pad2d(a.astype(f32) * scaling, N_pad, R_pad)
    biasp = _maybe_pad2d(bias.astype(f32).reshape(1, N), 1, N_pad)

    grid = (M_pad // tm, N_pad // tn, K_pad // tk)
    last_k = grid[2] - 1

    def kernel(x_ref, w0_ref, wl_ref, b_ref, a_ref, bias_ref, o_ref, xb_ref):
        j = pl.program_id(1)
        k = pl.program_id(2)

        # Output block index is (i, j): resident across the k reduction,
        # written back to HBM only after the last k step.
        @pl.when(k == 0)
        def _():
            o_ref[...] = jnp.zeros_like(o_ref)

        # xb depends only on (i, k) -> initialized/accumulated only on the
        # first j tile; persistent scratch reused by the remaining j tiles.
        @pl.when((k == 0) & (j == 0))
        def _():
            xb_ref[...] = jnp.zeros_like(xb_ref)

        x_blk = x_ref[...]

        # Dense path: merged weight tile formed on the VPU (hidden under MXU).
        # nt contraction (contract over in_features of both operands), same
        # pattern as q @ k.T in flash attention -- no explicit transpose.
        w_blk = w0_ref[...] + wl_ref[...]
        o_ref[...] += lax.dot_general(
            x_blk, w_blk,
            dimension_numbers=(((1,), (1,)), ((), ())),
            preferred_element_type=jnp.float32,
        )

        # Low-rank stage 1: xb += x_tile @ B_tile.T, only while j == 0.
        @pl.when(j == 0)
        def _():
            k_off = pl.multiple_of(k * tk, tk)
            b_blk = b_ref[:, pl.ds(k_off, tk)]
            xb_ref[...] += lax.dot_general(
                x_blk, b_blk,
                dimension_numbers=(((1,), (1,)), ((), ())),
                preferred_element_type=jnp.float32,
            )

        # Finalize: low-rank stage 2 + bias, exactly once per output tile.
        @pl.when(k == last_k)
        def _():
            lora_out = lax.dot_general(
                xb_ref[...], a_ref[...],
                dimension_numbers=(((1,), (1,)), ((), ())),
                preferred_element_type=jnp.float32,
            )
            o_ref[...] += lora_out + bias_ref[...]

    out_padded = pl.pallas_call(
        kernel,
        out_shape=jax.ShapeDtypeStruct((M_pad, N_pad), f32),
        grid=grid,
        in_specs=[
            pl.BlockSpec((tm, tk), lambda i, j, k: (i, k)),        # x
            pl.BlockSpec((tn, tk), lambda i, j, k: (j, k)),        # W0
            pl.BlockSpec((tn, tk), lambda i, j, k: (j, k)),        # W_lora
            pl.BlockSpec((R_pad, K_pad), lambda i, j, k: (0, 0)),  # B (fully VMEM-resident)
            pl.BlockSpec((tn, R_pad), lambda i, j, k: (j, 0)),     # A * scaling
            pl.BlockSpec((1, tn), lambda i, j, k: (0, j)),         # bias
        ],
        out_specs=pl.BlockSpec((tm, tn), lambda i, j, k: (i, j)),
        scratch_shapes=[pltpu.VMEM((tm, R_pad), f32)],             # xb = x @ B.T
        compiler_params=pltpu.CompilerParams(
            # Only the i axis is parallel: the j==0 guard requires that every
            # core sees j == 0 for each i row it owns (k stays innermost,
            # j the middle sequential axis).
            dimension_semantics=("parallel", "arbitrary", "arbitrary"),
            vmem_limit_bytes=_vmem_limit_bytes(tm, tn, tk, R_pad, K_pad, vmem_cap),
        ),
    )(xp, w0p, wlp, bp, ap, biasp)

    if M_pad == M and N_pad == N:
        return out_padded
    return out_padded[:M, :N]


if __name__ == "__main__":
    # Small, deterministic setup consistent with the module:
    #   original_linear = nn.Linear(in_features=32, out_features=16)
    #   LoRALayer(rank=4, alpha=1.0)
    batch, in_features, out_features, rank, alpha = 8, 32, 16, 4, 1.0

    key = jax.random.PRNGKey(0)
    kx, kw0, kb0, kwl, ka, kb = jax.random.split(key, 6)

    x = jax.random.normal(kx, (batch, in_features), dtype=jnp.float32)
    # original_linear params
    w0 = jax.random.normal(kw0, (out_features, in_features), dtype=jnp.float32)
    bias = jax.random.normal(kb0, (out_features,), dtype=jnp.float32)
    # LoRALayer params (LoRALayer has its OWN full `weight`, per the module)
    w_lora = jax.random.normal(kwl, (out_features, in_features), dtype=jnp.float32)
    a = jax.random.normal(ka, (out_features, rank), dtype=jnp.float32) * 0.001
    b = jax.random.normal(kb, (rank, in_features), dtype=jnp.float32) * 0.001

    out = lora_linear(x, w0, bias, w_lora, a, b, alpha=alpha)
    out = jax.block_until_ready(out)

    # Pure-JAX reference (mirrors the PyTorch math exactly).
    delta_w = (a @ b) * (alpha / rank)
    ref = x @ w0.T + bias + x @ (w_lora + delta_w).T
    assert out.shape == (batch, out_features)
    assert jnp.allclose(out, ref, atol=1e-4, rtol=1e-4)

    print("KERNEL_OK")
</pallas_src>

<mosaic_0001>
module attributes {stable_mosaic.version = 11 : i64} {
  func.func @kernel(%arg0: i32, %arg1: i32, %arg2: i32, %arg3: memref<8x128xf32, #tpu.memory_space<vmem>>, %arg4: memref<128x128xf32, #tpu.memory_space<vmem>>, %arg5: memref<128x128xf32, #tpu.memory_space<vmem>>, %arg6: memref<128x128xf32, #tpu.memory_space<vmem>>, %arg7: memref<128x128xf32, #tpu.memory_space<vmem>>, %arg8: memref<1x128xf32, #tpu.memory_space<vmem>>, %arg9: memref<8x128xf32, #tpu.memory_space<vmem>>, %arg10: memref<8x128xf32, #tpu.memory_space<vmem>>) attributes {dimension_semantics = [#tpu.dimension_semantics<parallel>, #tpu.dimension_semantics<arbitrary>, #tpu.dimension_semantics<arbitrary>], iteration_bounds = array<i64: 1, 1, 1>, scalar_prefetch = 0 : i64, scratch_operands = 1 : i64, tpu.core_type = #tpu.core_type<tc>, window_params = [{transform_indices = @transform_0, window_bounds = array<i64: 8, 128>}, {transform_indices = @transform_1, window_bounds = array<i64: 128, 128>}, {transform_indices = @transform_2, window_bounds = array<i64: 128, 128>}, {pipeline_mode = #tpu.pipeline_mode<synchronous>, transform_indices = @transform_3, window_bounds = array<i64: 128, 128>}, {transform_indices = @transform_4, window_bounds = array<i64: 128, 128>}, {transform_indices = @transform_5, window_bounds = array<i64: 1, 128>}, {transform_indices = @transform_6, window_bounds = array<i64: 8, 128>}]} {
    %c0_i32 = arith.constant 0 : i32
    %0 = arith.cmpi eq, %arg2, %c0_i32 : i32
    %1 = arith.extui %0 : i1 to i32
    %c0_i32_0 = arith.constant 0 : i32
    %2 = arith.cmpi ne, %1, %c0_i32_0 : i32
    scf.if %2 {
      %cst_17 = arith.constant 0.000000e+00 : f32
      %22 = vector.broadcast %cst_17 : f32 to vector<8x128xf32>
      %c0_18 = arith.constant 0 : index
      %c0_19 = arith.constant 0 : index
      %23 = vector.load %arg9[%c0_18, %c0_19] : memref<8x128xf32, #tpu.memory_space<vmem>>, vector<8x128xf32>
      tpu.vector_store %arg9[%c0_18, %c0_19], %22 {strides = array<i32>} : memref<8x128xf32, #tpu.memory_space<vmem>>, vector<8x128xf32>,
    } else {
    }
    %c0_i32_1 = arith.constant 0 : i32
    %3 = arith.cmpi eq, %arg2, %c0_i32_1 : i32
    %c0_i32_2 = arith.constant 0 : i32
    %4 = arith.cmpi eq, %arg1, %c0_i32_2 : i32
    %5 = arith.andi %3, %4 : i1
    %6 = arith.extui %5 : i1 to i32
    %c0_i32_3 = arith.constant 0 : i32
    %7 = arith.cmpi ne, %6, %c0_i32_3 : i32
    scf.if %7 {
      %cst_17 = arith.constant 0.000000e+00 : f32
      %22 = vector.broadcast %cst_17 : f32 to vector<8x128xf32>
      %c0_18 = arith.constant 0 : index
      %c0_19 = arith.constant 0 : index
      %23 = vector.load %arg10[%c0_18, %c0_19] : memref<8x128xf32, #tpu.memory_space<vmem>>, vector<8x128xf32>
      tpu.vector_store %arg10[%c0_18, %c0_19], %22 {strides = array<i32>} : memref<8x128xf32, #tpu.memory_space<vmem>>, vector<8x128xf32>,
    } else {
    }
    %c0 = arith.constant 0 : index
    %c0_4 = arith.constant 0 : index
    %8 = vector.load %arg3[%c0, %c0_4] : memref<8x128xf32, #tpu.memory_space<vmem>>, vector<8x128xf32>
    %c0_5 = arith.constant 0 : index
    %c0_6 = arith.constant 0 : index
    %9 = vector.load %arg4[%c0_5, %c0_6] : memref<128x128xf32, #tpu.memory_space<vmem>>, vector<128x128xf32>
    %c0_7 = arith.constant 0 : index
    %c0_8 = arith.constant 0 : index
    %10 = vector.load %arg5[%c0_7, %c0_8] : memref<128x128xf32, #tpu.memory_space<vmem>>, vector<128x128xf32>
    %11 = arith.addf %9, %10 : vector<128x128xf32>
    %c0_9 = arith.constant 0 : index
    %c0_10 = arith.constant 0 : index
    %12 = vector.load %arg9[%c0_9, %c0_10] : memref<8x128xf32, #tpu.memory_space<vmem>>, vector<8x128xf32>
    %cst = arith.constant dense<0.000000e+00> : vector<8x128xf32>
    %13 = tpu.matmul %8, %11, %cst {dimension_numbers = #tpu.dot_dimension_numbers<[1], [1], [0], [0], [0, 0, 1, 0], [], []>} : vector<8x128xf32>, vector<128x128xf32>, vector<8x128xf32> -> vector<8x128xf32>
    %14 = arith.addf %12, %13 : vector<8x128xf32>
    %c0_11 = arith.constant 0 : index
    %c0_12 = arith.constant 0 : index
    %15 = vector.load %arg9[%c0_11, %c0_12] : memref<8x128xf32, #tpu.memory_space<vmem>>, vector<8x128xf32>
    tpu.vector_store %arg9[%c0_11, %c0_12], %14 {strides = array<i32>} : memref<8x128xf32, #tpu.memory_space<vmem>>, vector<8x128xf32>,
    %c0_i32_13 = arith.constant 0 : i32
    %16 = arith.cmpi eq, %arg1, %c0_i32_13 : i32
    %17 = arith.extui %16 : i1 to i32
    %c0_i32_14 = arith.constant 0 : i32
    %18 = arith.cmpi ne, %17, %c0_i32_14 : i32
    scf.if %18 {
      %c128_i32 = arith.constant 128 : i32
      %22 = arith.muli %arg2, %c128_i32 : i32
      %23 = tpu.assume_multiple %22, 128 : i32
      %c0_17 = arith.constant 0 : index
      %24 = arith.index_cast %23 : i32 to index
      %25 = vector.load %arg6[%c0_17, %24] : memref<128x128xf32, #tpu.memory_space<vmem>>, vector<128x128xf32>
      %c0_18 = arith.constant 0 : index
      %c0_19 = arith.constant 0 : index
      %26 = vector.load %arg10[%c0_18, %c0_19] : memref<8x128xf32, #tpu.memory_space<vmem>>, vector<8x128xf32>
      %cst_20 = arith.constant dense<0.000000e+00> : vector<8x128xf32>
      %27 = tpu.matmul %8, %25, %cst_20 {dimension_numbers = #tpu.dot_dimension_numbers<[1], [1], [0], [0], [0, 0, 1, 0], [], []>} : vector<8x128xf32>, vector<128x128xf32>, vector<8x128xf32> -> vector<8x128xf32>
      %28 = arith.addf %26, %27 : vector<8x128xf32>
      %c0_21 = arith.constant 0 : index
      %c0_22 = arith.constant 0 : index
      %29 = vector.load %arg10[%c0_21, %c0_22] : memref<8x128xf32, #tpu.memory_space<vmem>>, vector<8x128xf32>
      tpu.vector_store %arg10[%c0_21, %c0_22], %28 {strides = array<i32>} : memref<8x128xf32, #tpu.memory_space<vmem>>, vector<8x128xf32>,
    } else {
    }
    %c0_i32_15 = arith.constant 0 : i32
    %19 = arith.cmpi eq, %arg2, %c0_i32_15 : i32
    %20 = arith.extui %19 : i1 to i32
    %c0_i32_16 = arith.constant 0 : i32
    %21 = arith.cmpi ne, %20, %c0_i32_16 : i32
    scf.if %21 {
      %c0_17 = arith.constant 0 : index
      %c0_18 = arith.constant 0 : index
      %22 = vector.load %arg10[%c0_17, %c0_18] : memref<8x128xf32, #tpu.memory_space<vmem>>, vector<8x128xf32>
      %c0_19 = arith.constant 0 : index
      %c0_20 = arith.constant 0 : index
      %23 = vector.load %arg7[%c0_19, %c0_20] : memref<128x128xf32, #tpu.memory_space<vmem>>, vector<128x128xf32>
      %cst_21 = arith.constant dense<0.000000e+00> : vector<8x128xf32>
      %24 = tpu.matmul %22, %23, %cst_21 {dimension_numbers = #tpu.dot_dimension_numbers<[1], [1], [0], [0], [0, 0, 1, 0], [], []>} : vector<8x128xf32>, vector<128x128xf32>, vector<8x128xf32> -> vector<8x128xf32>
      %c0_22 = arith.constant 0 : index
      %c0_23 = arith.constant 0 : index
      %25 = vector.load %arg9[%c0_22, %c0_23] : memref<8x128xf32, #tpu.memory_space<vmem>>, vector<8x128xf32>
      %c0_24 = arith.constant 0 : index
      %c0_25 = arith.constant 0 : index
      %26 = vector.load %arg8[%c0_24, %c0_25] : memref<1x128xf32, #tpu.memory_space<vmem>>, vector<1x128xf32>
      %27 = vector.broadcast %26 : vector<1x128xf32> to vector<8x128xf32>
      %28 = arith.addf %24, %27 : vector<8x128xf32>
      %29 = arith.addf %25, %28 : vector<8x128xf32>
      %c0_26 = arith.constant 0 : index
      %c0_27 = arith.constant 0 : index
      %30 = vector.load %arg9[%c0_26, %c0_27] : memref<8x128xf32, #tpu.memory_space<vmem>>, vector<8x128xf32>
      tpu.vector_store %arg9[%c0_26, %c0_27], %29 {strides = array<i32>} : memref<8x128xf32, #tpu.memory_space<vmem>>, vector<8x128xf32>,
    } else {
    }
    return
  }
  func.func @transform_0(%arg0: i32, %arg1: i32, %arg2: i32) -> (i32, i32) {
    %c0_i32 = arith.constant 0 : i32
    return %arg0, %arg2 : i32, i32
  }
  func.func @transform_1(%arg0: i32, %arg1: i32, %arg2: i32) -> (i32, i32) {
    %c0_i32 = arith.constant 0 : i32
    return %arg1, %arg2 : i32, i32
  }
  func.func @transform_2(%arg0: i32, %arg1: i32, %arg2: i32) -> (i32, i32) {
    %c0_i32 = arith.constant 0 : i32
    return %arg1, %arg2 : i32, i32
  }
  func.func @transform_3(%arg0: i32, %arg1: i32, %arg2: i32) -> (i32, i32) {
    %c0_i32 = arith.constant 0 : i32
    %c0_i32_0 = arith.constant 0 : i32
    %c0_i32_1 = arith.constant 0 : i32
    return %c0_i32, %c0_i32_0 : i32, i32
  }
  func.func @transform_4(%arg0: i32, %arg1: i32, %arg2: i32) -> (i32, i32) {
    %c0_i32 = arith.constant 0 : i32
    %c0_i32_0 = arith.constant 0 : i32
    return %arg1, %c0_i32 : i32, i32
  }
  func.func @transform_5(%arg0: i32, %arg1: i32, %arg2: i32) -> (i32, i32) {
    %c0_i32 = arith.constant 0 : i32
    %c0_i32_0 = arith.constant 0 : i32
    return %c0_i32, %arg1 : i32, i32
  }
  func.func @transform_6(%arg0: i32, %arg1: i32, %arg2: i32) -> (i32, i32) {
    %c0_i32 = arith.constant 0 : i32
    return %arg0, %arg1 : i32, i32
  }
}

</mosaic_0001>

<bundles_post_ra>
// kernel: tpu_custom_call.1
= control target key start
LH: loop header
LB: loop body
LE: loop exit
PB: predicated region body
PF: predicated region fallthrough
CT: control target
= control target key end

     0   :  { %11 = vsyncpa [#allocation4], 0  ;;  %s864_s0 = inlined_call_operand.hbm [shape: f32[8,128], index: 0, kind: input, shape index: {}]   ;;  %s865_s1 = inlined_call_operand.hbm [shape: f32[128,128], index: 1, kind: input, shape index: {}]   ;;  %s866_s2 = inlined_call_operand.hbm [shape: f32[128,128], index: 2, kind: input, shape index: {}]   ;;  %s867_s3 = inlined_call_operand.hbm [shape: f32[128,128], index: 3, kind: input, shape index: {}]   ;;  %s868_s4 = inlined_call_operand.hbm [shape: f32[128,128], index: 4, kind: input, shape index: {}]   ;;  %s869_s5 = inlined_call_operand.vmem [shape: f32[1,128], index: 5, kind: input, shape index: {}]   ;;  %s870_s6 = inlined_call_operand.hbm [shape: f32[8,128], index: 6, kind: output, shape index: {}]  }
   0x1   :  { %12 = vsyncpa [#allocation7], 0 }
   0x2   :  { %13 = vsyncpa [#allocation10], 0 }
   0x3   :  { %14 = vsyncpa [#allocation5], 0  ;;  %s732_s21 = smov [#allocation6]  }
   0x4   :  { %s30_s22 = sshll.u32 %s732_s21, 4  ;;  %s31_s22 = int_to_ptr.vmem [resolvable:$true] %s30_s22 }
   0x5   :  { %s612_s23 = scalar_lea.vmem %s31_s22, 2048  ;;  %p617_p1 = scmp.lt.s32.totalorder %s31_s22, %s31_s22 }
   0x6   :  { %p613_p0 = scmp.ne.s32.totalorder %s31_s22, %s612_s23  ;;  %p618_p2 = scmp.lt.s32.totalorder %s612_s23, %s612_s23 }
   0x8   :  { %p619_p3 = por %p618_p2, %p617_p1 }
   0xa   :  { %p620_p4 = pnand %p619_p3, %p613_p0 }
   0xc   :  { %623 = shalt.err (!%p620_p4)
}
   0xd   :  { %s733_s24 = smov 128   ;;  %s734_s25 = smov 8  }
   0xe   :  { %36 = dma.hbm_to_vmem [thread:$0]  %s865_s1, 2048, %s31_s22, [#allocation7], %s733_s24, %s733_s24, %s734_s25  }
   0xf   :  { %s735_s28 = smov [#allocation9]   ;;  %s736_s30 = smov [#allocation3]  }
  0x10   :  { %s54_s29 = sshll.u32 %s735_s28, 4  ;;  %s21_s7 = sshll.u32 %s736_s30, 4  ;;  %s55_s29 = int_to_ptr.vmem [resolvable:$true] %s54_s29  ;;  %s22_s7 = int_to_ptr.vmem [resolvable:$true] %s21_s7 }
  0x11   :  { %s632_s8 = scalar_lea.vmem %s55_s29, 2048  ;;  %p637_p6 = scmp.lt.s32.totalorder %s55_s29, %s55_s29 }
  0x12   :  { %p633_p5 = scmp.ne.s32.totalorder %s55_s29, %s632_s8  ;;  %p638_p7 = scmp.lt.s32.totalorder %s632_s8, %s632_s8 }
  0x14   :  { %p639_p8 = por %p638_p7, %p637_p6 }
  0x16   :  { %p640_p9 = pnand %p639_p8, %p633_p5 }
  0x18   :  { %643 = shalt.err (!%p640_p9)
}
  0x19   :  { %60 = dma.hbm_to_vmem [thread:$0]  %s867_s3, 2048, %s55_s29, [#allocation10], %s733_s24, %s733_s24, %s734_s25  }
  0x1a   :  { %s652_s1 = scalar_lea.vmem %s22_s7, 128  ;;  %p657_p11 = scmp.lt.s32.totalorder %s22_s7, %s22_s7 }
  0x1b   :  { %p653_p10 = scmp.ne.s32.totalorder %s22_s7, %s652_s1  ;;  %p658_p12 = scmp.lt.s32.totalorder %s652_s1, %s652_s1 }
  0x1d   :  { %p659_p13 = por %p658_p12, %p657_p11 }
  0x1f   :  { %p660_p0 = pnand %p659_p13, %p653_p10 }
  0x21   :  { %663 = shalt.err (!%p660_p0)
}
  0x22   :  { %24 = dma.hbm_to_vmem [thread:$0]  %s864_s0, 128, %s22_s7, [#allocation4]  }
  0x23   :  { %s737_s13 = smov [#allocation8]   ;;  %s738_s15 = smov [#allocation11]  }
  0x24   :  { %s42_s14 = sshll.u32 %s737_s13, 4  ;;  %s66_s16 = sshll.u32 %s738_s15, 4  ;;  %s43_s14 = int_to_ptr.vmem [resolvable:$true] %s42_s14  ;;  %s67_s16 = int_to_ptr.vmem [resolvable:$true] %s66_s16 }
  0x25   :  { %s672_s17 = scalar_lea.vmem %s43_s14, 2048  ;;  %p677_p2 = scmp.lt.s32.totalorder %s43_s14, %s43_s14 }
  0x26   :  { %p673_p1 = scmp.ne.s32.totalorder %s43_s14, %s672_s17  ;;  %p678_p3 = scmp.lt.s32.totalorder %s672_s17, %s672_s17 }
  0x28   :  { %p679_p4 = por %p678_p3, %p677_p2 }
  0x2a   :  { %p680_p5 = pnand %p679_p4, %p673_p1 }
  0x2c   :  { %683 = shalt.err (!%p680_p5)
}
  0x2d   :  { %48 = dma.hbm_to_vmem [thread:$0]  %s866_s2, 2048, %s43_s14, [#allocation7], %s733_s24, %s733_s24, %s734_s25  }
  0x2e   :  { %s692_s0 = scalar_lea.vmem %s67_s16, 2048  ;;  %p697_p7 = scmp.lt.s32.totalorder %s67_s16, %s67_s16 }
  0x2f   :  { %p693_p6 = scmp.ne.s32.totalorder %s67_s16, %s692_s0  ;;  %p698_p8 = scmp.lt.s32.totalorder %s692_s0, %s692_s0 }
  0x31   :  { %p699_p9 = por %p698_p8, %p697_p7 }
  0x33   :  { %p700_p10 = pnand %p699_p9, %p693_p6 }
  0x35   :  { %703 = shalt.err (!%p700_p10)
}
  0x36   :  { %72 = dma.hbm_to_vmem [thread:$0]  %s868_s4, 2048, %s67_s16, [#allocation10], %s733_s24, %s733_s24, %s734_s25  }
  0x37   :  { %724 = dma.done.wait [#allocation4], 128  }
  0x38   :  { %725 = vsyncadd [#allocation4], 4294967168 }
  0x39   :  { %726 = dma.done.wait [#allocation7], 4096  }
  0x3a   :  { %727 = vsyncadd [#allocation7], 4294963200 }
  0x3b   :  { %728 = dma.done.wait [#allocation10], 4096  }
  0x3c   :  { %729 = vsyncadd [#allocation10], 4294963200  ;;  %v739_v0 = vmov 0.0   ;;  %vm740_vm0 = vmmov 0   ;;  %v245_v1 = vld [vmem:[#allocation9 + $0x78] sm:$0xff]  ;;  %v244_v2 = vld [vmem:[#allocation9 + $0x70] sm:$0xff] }
  0x3d   :  { %524 = vmatprep.subr.mxu1 %v739_v0  ;;  %556 = vmatprep.mubr.msk.f32.mxu1 %vm740_vm0, %v739_v0  ;;  %v243_v3 = vld [vmem:[#allocation9 + $0x68] sm:$0xff]  ;;  %v117_v4 = vld [vmem:[#allocation6 + $0x78] sm:$0xff]  ;;  %v116_v6 = vld [vmem:[#allocation6 + $0x70] sm:$0xff]  ;;  %s741_s21 = smov [#allocation12]  }
  0x3e   :  { %489 = vmatprep.subr.mxu0 %v739_v0  ;;  %521 = vmatprep.mubr.msk.f32.mxu0 %vm740_vm0, %v739_v0  ;;  %v133_v5 = vld [vmem:[#allocation8 + $0x78] sm:$0xff]  ;;  %v132_v7 = vld [vmem:[#allocation8 + $0x70] sm:$0xff]  ;;  %v242_v10 = vld [vmem:[#allocation9 + $0x60] sm:$0xff]  ;;  %s425_s22 = sshll.u32 %s741_s21, 4  ;;  %s426_s22 = int_to_ptr.vmem [resolvable:$true] %s425_s22 }
  0x3f   :  { %525 = vmatpush3.xpose.msra.mxu1 %v245_v1  ;;  %v149_v8 = vadd.f32 %v133_v5, %v117_v4  ;;  %v148_v9 = vadd.f32 %v132_v7, %v116_v6  ;;  %v115_v11 = vld [vmem:[#allocation6 + $0x68] sm:$0xff]  ;;  %v241_v14 = vld [vmem:[#allocation9 + $0x58] sm:$0xff]  ;;  %v114_v15 = vld [vmem:[#allocation6 + $0x60] sm:$0xff]  ;;  %s704_s23 = scalar_lea.vmem %s426_s22, 128  ;;  %p709_p12 = scmp.lt.s32.totalorder %s426_s22, %s426_s22 }
  0x40   :  { %526 = vmatprep.subr.mxu1 %v739_v0  ;;  %v131_v12 = vld [vmem:[#allocation8 + $0x68] sm:$0xff]  ;;  %v130_v16 = vld [vmem:[#allocation8 + $0x60] sm:$0xff]  ;;  %v240_v18 = vld [vmem:[#allocation9 + $0x50] sm:$0xff]  ;;  %p705_p11 = scmp.ne.s32.totalorder %s426_s22, %s704_s23  ;;  %p710_p13 = scmp.lt.s32.totalorder %s704_s23, %s704_s23 }
  0x41   :  { %490 = vmatpush3.xpose.msra.mxu0 %v149_v8  ;;  %v147_v13 = vadd.f32 %v131_v12, %v115_v11  ;;  %v146_v17 = vadd.f32 %v130_v16, %v114_v15  ;;  %v113_v19 = vld [vmem:[#allocation6 + $0x58] sm:$0xff]  ;;  %v239_v22 = vld [vmem:[#allocation9 + $0x48] sm:$0xff]  ;;  %v112_v23 = vld [vmem:[#allocation6 + $0x50] sm:$0xff] }
  0x42   :  { %491 = vmatprep.subr.mxu0 %v739_v0  ;;  %v129_v20 = vld [vmem:[#allocation8 + $0x58] sm:$0xff]  ;;  %v128_v24 = vld [vmem:[#allocation8 + $0x50] sm:$0xff]  ;;  %v238_v26 = vld [vmem:[#allocation9 + $0x40] sm:$0xff]  ;;  %p711_p0 = por %p710_p13, %p709_p12 }
  0x43   :  { %527 = vmatpush3.xpose.msra.mxu1 %v244_v2  ;;  %v145_v21 = vadd.f32 %v129_v20, %v113_v19  ;;  %v144_v25 = vadd.f32 %v128_v24, %v112_v23  ;;  %v111_v27 = vld [vmem:[#allocation6 + $0x48] sm:$0xff]  ;;  %v237_v30 = vld [vmem:[#allocation9 + $0x38] sm:$0xff]  ;;  %v110_v31 = vld [vmem:[#allocation6 + $0x40] sm:$0xff] }
  0x44   :  { %528 = vmatprep.subr.mxu1 %v739_v0  ;;  %v127_v28 = vld [vmem:[#allocation8 + $0x48] sm:$0xff]  ;;  %v126_v32 = vld [vmem:[#allocation8 + $0x40] sm:$0xff]  ;;  %v236_v34 = vld [vmem:[#allocation9 + $0x30] sm:$0xff]  ;;  %p712_p1 = pnand %p711_p0, %p705_p11 }
  0x45   :  { %492 = vmatpush3.xpose.msra.mxu0 %v148_v9  ;;  %v143_v29 = vadd.f32 %v127_v28, %v111_v27  ;;  %v142_v33 = vadd.f32 %v126_v32, %v110_v31  ;;  %v109_v35 = vld [vmem:[#allocation6 + $0x38] sm:$0xff]  ;;  %v235_v38 = vld [vmem:[#allocation9 + $0x28] sm:$0xff]  ;;  %v108_v39 = vld [vmem:[#allocation6 + $0x30] sm:$0xff] }
  0x46   :  { %493 = vmatprep.subr.mxu0 %v739_v0  ;;  %v125_v36 = vld [vmem:[#allocation8 + $0x38] sm:$0xff]  ;;  %v124_v40 = vld [vmem:[#allocation8 + $0x30] sm:$0xff]  ;;  %v234_v42 = vld [vmem:[#allocation9 + $0x20] sm:$0xff] }
  0x47   :  { %529 = vmatpush3.xpose.msra.mxu1 %v243_v3  ;;  %v141_v37 = vadd.f32 %v125_v36, %v109_v35  ;;  %v140_v41 = vadd.f32 %v124_v40, %v108_v39  ;;  %v107_v43 = vld [vmem:[#allocation6 + $0x28] sm:$0xff]  ;;  %v233_v46 = vld [vmem:[#allocation9 + $0x18] sm:$0xff]  ;;  %v106_v47 = vld [vmem:[#allocation6 + $0x20] sm:$0xff] }
  0x48   :  { %530 = vmatprep.subr.mxu1 %v739_v0  ;;  %v123_v44 = vld [vmem:[#allocation8 + $0x28] sm:$0xff]  ;;  %v122_v48 = vld [vmem:[#allocation8 + $0x20] sm:$0xff]  ;;  %v232_v50 = vld [vmem:[#allocation9 + $0x10] sm:$0xff] }
  0x49   :  { %494 = vmatpush3.xpose.msra.mxu0 %v147_v13  ;;  %v139_v45 = vadd.f32 %v123_v44, %v107_v43  ;;  %v138_v49 = vadd.f32 %v122_v48, %v106_v47  ;;  %v105_v51 = vld [vmem:[#allocation6 + $0x18] sm:$0xff]  ;;  %v231_v54 = vld [vmem:[#allocation9 + $0x8] sm:$0xff]  ;;  %v104_v55 = vld [vmem:[#allocation6 + $0x10] sm:$0xff] }
  0x4a   :  { %495 = vmatprep.subr.mxu0 %v739_v0  ;;  %v121_v52 = vld [vmem:[#allocation8 + $0x18] sm:$0xff]  ;;  %v120_v56 = vld [vmem:[#allocation8 + $0x10] sm:$0xff]  ;;  %v230_v58 = vld [vmem:[#allocation9] sm:$0xff] }
  0x4b   :  { %531 = vmatpush3.xpose.msra.mxu1 %v242_v10  ;;  %v137_v53 = vadd.f32 %v121_v52, %v105_v51  ;;  %v136_v57 = vadd.f32 %v120_v56, %v104_v55  ;;  %v103_v59 = vld [vmem:[#allocation6 + $0x8] sm:$0xff]  ;;  %v101_v61 = vld [vmem:[#allocation3] sm:$0xff]  ;;  %v102_v63 = vld [vmem:[#allocation6] sm:$0xff] }
  0x4c   :  { %532 = vmatprep.subr.mxu1 %v739_v0  ;;  %v119_v60 = vld [vmem:[#allocation8 + $0x8] sm:$0xff]  ;;  %v118_v1 = vld [vmem:[#allocation8] sm:$0xff]  ;;  %v338_v3 = vld [vmem:[#allocation11 + $0x78] sm:$0xff] }
  0x4d   :  { %496 = vmatpush3.xpose.msra.mxu0 %v146_v17  ;;  %v135_v62 = vadd.f32 %v119_v60, %v103_v59  ;;  %v134_v2 = vadd.f32 %v118_v1, %v102_v63  ;;  %v337_v4 = vld [vmem:[#allocation11 + $0x70] sm:$0xff]  ;;  %v336_v5 = vld [vmem:[#allocation11 + $0x68] sm:$0xff]  ;;  %v335_v6 = vld [vmem:[#allocation11 + $0x60] sm:$0xff] }
  0x4e   :  { %497 = vmatprep.subr.mxu0 %v739_v0  ;;  %v334_v7 = vld [vmem:[#allocation11 + $0x58] sm:$0xff]  ;;  %v333_v8 = vld [vmem:[#allocation11 + $0x50] sm:$0xff]  ;;  %v332_v9 = vld [vmem:[#allocation11 + $0x48] sm:$0xff] }
  0x4f   :  { %533 = vmatpush3.xpose.msra.mxu1 %v241_v14  ;;  %v331_v10 = vld [vmem:[#allocation11 + $0x40] sm:$0xff]  ;;  %v330_v11 = vld [vmem:[#allocation11 + $0x38] sm:$0xff]  ;;  %v329_v12 = vld [vmem:[#allocation11 + $0x30] sm:$0xff] }
  0x50   :  { %534 = vmatprep.subr.mxu1 %v739_v0  ;;  %v328_v13 = vld [vmem:[#allocation11 + $0x28] sm:$0xff]  ;;  %v327_v14 = vld [vmem:[#allocation11 + $0x20] sm:$0xff]  ;;  %v326_v15 = vld [vmem:[#allocation11 + $0x18] sm:$0xff] }
  0x51   :  { %498 = vmatpush3.xpose.msra.mxu0 %v145_v21  ;;  %v325_v16 = vld [vmem:[#allocation11 + $0x10] sm:$0xff]  ;;  %v324_v17 = vld [vmem:[#allocation11 + $0x8] sm:$0xff]  ;;  %v437_v23 = vld [vmem:[%s869_s5] ss:$0 sm:$0xff] }
  0x52   :  { %499 = vmatprep.subr.mxu0 %v739_v0 }
  0x53   :  { %535 = vmatpush3.xpose.msra.mxu1 %v240_v18  ;;  %v323_v18 = vld [vmem:[#allocation11] sm:$0xff] }
  0x54   :  { %536 = vmatprep.subr.mxu1 %v739_v0 }
  0x55   :  { %500 = vmatpush3.xpose.msra.mxu0 %v144_v25 }
  0x56   :  { %501 = vmatprep.subr.mxu0 %v739_v0 }
  0x57   :  { %537 = vmatpush3.xpose.msra.mxu1 %v239_v22 }
  0x58   :  { %538 = vmatprep.subr.mxu1 %v739_v0 }
  0x59   :  { %502 = vmatpush3.xpose.msra.mxu0 %v143_v29 }
  0x5a   :  { %503 = vmatprep.subr.mxu0 %v739_v0 }
  0x5b   :  { %539 = vmatpush3.xpose.msra.mxu1 %v238_v26 }
  0x5c   :  { %540 = vmatprep.subr.mxu1 %v739_v0 }
  0x5d   :  { %504 = vmatpush3.xpose.msra.mxu0 %v142_v33 }
  0x5e   :  { %505 = vmatprep.subr.mxu0 %v739_v0 }
  0x5f   :  { %541 = vmatpush3.xpose.msra.mxu1 %v237_v30 }
  0x60   :  { %542 = vmatprep.subr.mxu1 %v739_v0 }
  0x61   :  { %506 = vmatpush3.xpose.msra.mxu0 %v141_v37 }
  0x62   :  { %507 = vmatprep.subr.mxu0 %v739_v0 }
  0x63   :  { %543 = vmatpush3.xpose.msra.mxu1 %v236_v34 }
  0x64   :  { %544 = vmatprep.subr.mxu1 %v739_v0 }
  0x65   :  { %508 = vmatpush3.xpose.msra.mxu0 %v140_v41 }
  0x66   :  { %509 = vmatprep.subr.mxu0 %v739_v0 }
  0x67   :  { %545 = vmatpush3.xpose.msra.mxu1 %v235_v38 }
  0x68   :  { %546 = vmatprep.subr.mxu1 %v739_v0 }
  0x69   :  { %510 = vmatpush3.xpose.msra.mxu0 %v139_v45 }
  0x6a   :  { %511 = vmatprep.subr.mxu0 %v739_v0 }
  0x6b   :  { %547 = vmatpush3.xpose.msra.mxu1 %v234_v42 }
  0x6c   :  { %548 = vmatprep.subr.mxu1 %v739_v0 }
  0x6d   :  { %512 = vmatpush3.xpose.msra.mxu0 %v138_v49 }
  0x6e   :  { %513 = vmatprep.subr.mxu0 %v739_v0 }
  0x6f   :  { %549 = vmatpush3.xpose.msra.mxu1 %v233_v46 }
  0x70   :  { %550 = vmatprep.subr.mxu1 %v739_v0 }
  0x71   :  { %514 = vmatpush3.xpose.msra.mxu0 %v137_v53 }
  0x72   :  { %515 = vmatprep.subr.mxu0 %v739_v0 }
  0x73   :  { %551 = vmatpush3.xpose.msra.mxu1 %v232_v50 }
  0x74   :  { %552 = vmatprep.subr.mxu1 %v739_v0 }
  0x75   :  { %516 = vmatpush3.xpose.msra.mxu0 %v136_v57 }
  0x76   :  { %517 = vmatprep.subr.mxu0 %v739_v0 }
  0x77   :  { %553 = vmatpush3.xpose.msra.mxu1 %v231_v54 }
  0x78   :  { %554 = vmatprep.subr.mxu1 %v739_v0 }
  0x79   :  { %518 = vmatpush3.xpose.msra.mxu0 %v135_v62 }
  0x7a   :  { %519 = vmatprep.subr.mxu0 %v739_v0 }
  0x7b   :  { %555 = vmatpush3.xpose.msra.mxu1 %v230_v58 }
  0x7d   :  { %520 = vmatpush3.xpose.msra.mxu0 %v134_v2 }
  0x7e   :  { %557 = vmatmul.mubr.f32.vlgmr.msra.gmra.mxu1 %v101_v61  ;;  %559 = vmatprep.subr.mxu0 %v739_v0 }
  0x80   :  { %522 = vmatmul.mubr.f32.vlgmr.msra.gmra.mxu0 %v101_v61 }
  0x81   :  { %560 = vmatpush3.xpose.msra.mxu0 %v338_v3  ;;  %591 = vmatprep.mubr.msk.f32.mxu0 %vm740_vm0, %v739_v0 }
  0x82   :  { %561 = vmatprep.subr.mxu0 %v739_v0 }
  0x85   :  { %562 = vmatpush3.xpose.msra.mxu0 %v337_v4 }
  0x86   :  { %563 = vmatprep.subr.mxu0 %v739_v0 }
  0x89   :  { %564 = vmatpush3.xpose.msra.mxu0 %v336_v5 }
  0x8a   :  { %565 = vmatprep.subr.mxu0 %v739_v0 }
  0x8d   :  { %566 = vmatpush3.xpose.msra.mxu0 %v335_v6 }
  0x8e   :  { %567 = vmatprep.subr.mxu0 %v739_v0 }
  0x91   :  { %568 = vmatpush3.xpose.msra.mxu0 %v334_v7 }
  0x92   :  { %569 = vmatprep.subr.mxu0 %v739_v0 }
  0x95   :  { %570 = vmatpush3.xpose.msra.mxu0 %v333_v8 }
  0x96   :  { %571 = vmatprep.subr.mxu0 %v739_v0 }
  0x99   :  { %572 = vmatpush3.xpose.msra.mxu0 %v332_v9 }
  0x9a   :  { %573 = vmatprep.subr.mxu0 %v739_v0 }
  0x9d   :  { %574 = vmatpush3.xpose.msra.mxu0 %v331_v10 }
  0x9e   :  { %575 = vmatprep.subr.mxu0 %v739_v0 }
  0xa1   :  { %576 = vmatpush3.xpose.msra.mxu0 %v330_v11 }
  0xa2   :  { %577 = vmatprep.subr.mxu0 %v739_v0 }
  0xa5   :  { %578 = vmatpush3.xpose.msra.mxu0 %v329_v12 }
  0xa6   :  { %579 = vmatprep.subr.mxu0 %v739_v0 }
  0xa9   :  { %580 = vmatpush3.xpose.msra.mxu0 %v328_v13 }
  0xaa   :  { %581 = vmatprep.subr.mxu0 %v739_v0 }
  0xad   :  { %582 = vmatpush3.xpose.msra.mxu0 %v327_v14 }
  0xae   :  { %583 = vmatprep.subr.mxu0 %v739_v0 }
  0xb1   :  { %584 = vmatpush3.xpose.msra.mxu0 %v326_v15 }
  0xb2   :  { %585 = vmatprep.subr.mxu0 %v739_v0 }
  0xb5   :  { %586 = vmatpush3.xpose.msra.mxu0 %v325_v16 }
  0xb6   :  { %587 = vmatprep.subr.mxu0 %v739_v0 }
  0xb9   :  { %588 = vmatpush3.xpose.msra.mxu0 %v324_v17 }
  0xba   :  { %589 = vmatprep.subr.mxu0 %v739_v0 }
  0xbd   :  { %590 = vmatpush3.xpose.msra.mxu0 %v323_v18 }
 0x13e   :  { %v313_v19 = vpop.f32.mrf.mxu1 }
 0x13f   :  { %592 = vmatmul.mubr.f32.vlgmr.msra.gmra.mxu0 %v313_v19 }
 0x140   :  { %v558_v20 = vpop.f32.mrf.mxu1  ;;  %v217_v21 = vpop.f32.mrf.mxu0 }
 0x142   :  { %v523_v22 = vpop.f32.mrf.mxu0 }
 0x1ff   :  { %v413_v24 = vpop.f32.mrf.mxu0 }
 0x200   :  { %v414_v25 = vadd.f32 %v437_v23, %v413_v24 }
 0x201   :  { %v593_v26 = vpop.f32.mrf.mxu0 }
 0x202   :  { %v417_v27 = vadd.f32 %v414_v25, %v217_v21 }
 0x204   :  { %418 = vst [vmem:[#allocation12] sm:$0xff] %v417_v27 }
 0x205   :  { %715 = shalt.err (!%p712_p1)
}
 0x206   :  { %428 = dma.vmem_to_hbm [thread:$0]  %s426_s22, 128, %s870_s6, [#allocation5]  }
 0x207   :  { %730 = dma.done.wait [#allocation5], 128  }
 0x208   :  { %731 = vsyncadd [#allocation5], 4294967168 }
 0x209   :  { %432 = vsyncpa [#allocation4], 1 }
 0x20a   :  { %433 = vsyncpa [#allocation7], 1 }
 0x20b   :  { %434 = vsyncpa [#allocation10], 1 }
 0x20c   :  { %435 = vsyncpa [#allocation5], 1 }

</bundles_post_ra>
